<compile_context>
chip_gen: v7x
topology: tpu7x:2x2x1
jax: 0.10.0
libtpu: 0.0.40
codegen_flags: <defaults>
</compile_context>

<pallas_src>
import functools

import jax
import jax.numpy as jnp
from jax import lax
from jax.experimental import pallas as pl
from jax.experimental.pallas import tpu as pltpu


def _proj_kernel(x_ref, w_ref, b_ref, o_ref, *, chunk):
    # x_ref: (1, C, tn)   tokens, lane axis = tn (dense)
    # w_ref: (E, C)       full weight (PyTorch nn.Linear layout, no transpose)
    # b_ref: (1, E)       bias row (f32)
    # o_ref: (1, tn, E)   output tile already in the final (B, N, E) layout
    x = x_ref[0]                        # (C, tn)
    w = w_ref[...]                      # (E, C)
    b = b_ref[...].astype(jnp.float32)  # (1, E)
    C, tn = x.shape
    E = w.shape[0]

    use_vpu = C <= 8
    if use_vpu:
        wf = w.astype(jnp.float32)      # hoisted: cast once, not per-c / per-chunk

    # Static unroll over token chunks: bounds the (E, chunk) f32 accumulator
    # that is live across the C loop to <= ~16 vregs (review item 3).
    for q in range(0, tn, chunk):
        cs = min(chunk, tn - q)
        xq = x[:, q:q + cs]             # (C, cs), lane-dense
        if use_vpu:
            # C is far too small for the MXU (~3% systolic depth): C unrolled
            # VPU FMAs on lane-dense (E, cs) vregs.
            xqf = xq.astype(jnp.float32)    # hoisted out of the c loop
            acc = jnp.zeros((E, cs), jnp.float32)
            for c in range(C):              # static unroll (C known at trace time)
                acc = acc + wf[:, c:c + 1] * xqf[c:c + 1, :]
        else:
            # Realistic patch-embed sizes (C >= 128): MXU, f32 accumulate.
            acc = lax.dot_general(
                w, xq, (((1,), (0,)), ((), ())),
                preferred_element_type=jnp.float32)
        # In-kernel transpose (XLU) -> write straight into the (B, N, E) slab.
        out = jnp.transpose(acc, (1, 0)) + b            # (cs, E)
        o_ref[0, q:q + cs, :] = out.astype(o_ref.dtype)


def _round_up(v, m):
    return ((v + m - 1) // m) * m


def _num_tensorcores():
    # Conservative: only schedule for dual TensorCores on parts newer than v6e.
    try:
        kind = jax.devices()[0].device_kind.lower()
    except Exception:
        return 1
    for tag in ("v2", "v3", "v4", "v5", "v6"):
        if tag in kind:
            return 1
    return 2


def mlp_forward(x, weight, bias, *, tn_max=2048, out_dtype=None):
    """x: (B, C, H, W); weight: (E, C); bias: (E,) -> (B, H*W, E)."""
    B, C, H, W = x.shape
    E = weight.shape[0]
    N = H * W
    out_dtype = x.dtype if out_dtype is None else out_dtype

    # Free, contiguous reshape: keep channel-major so N is the lane axis of the
    # input blocks (no wrapper-side transpose of x, and none of the output).
    x3 = x.reshape(B, C, N)
    w = weight                               # (E, C), used directly in-kernel
    b_row = bias.reshape(1, E).astype(jnp.float32)

    # Token tile: whole N when it fits, else a multiple-of-128 tile (multiple
    # of 256 for the MXU path) with a Pallas-clipped ragged tail.
    if N <= tn_max:
        tn = N
    else:
        tn = max(128, (tn_max // 128) * 128)
        if C > 8:
            tn = max(256, (tn // 256) * 256)   # full systolic passes (2x256 MXU)
    nt = pl.cdiv(N, tn)

    # Dual-TC parts only: guarantee >= 2 parallel grid steps so neither
    # TensorCore idles on single-batch inputs.  Never done on single-TC
    # v5e/v6e (extra steps are pure per-step overhead there).
    if B * nt < 2 and N >= 256 and _num_tensorcores() >= 2:
        tn = _round_up(pl.cdiv(N, 2), 128)
        nt = pl.cdiv(N, tn)
    grid = (B, nt)

    # In-kernel token chunk: bound the (E, chunk) f32 accumulator live across
    # the C loop (VPU branch) to <= ~16K elements (<= 16 vregs).
    if C <= 8:
        chunk = min(tn, max(128, ((16384 // max(E, 1)) // 128) * 128))
    else:
        chunk = tn

    # VMEM footprint with (8,128)-padded block shapes, double-buffering every
    # block (constant-index blocks may still be double-buffered), plus the
    # in-kernel accumulator / transposed-chunk staging.
    itm_in = jnp.dtype(x3.dtype).itemsize
    itm_w = jnp.dtype(w.dtype).itemsize
    itm_out = jnp.dtype(out_dtype).itemsize
    x_blk = _round_up(C, 8) * _round_up(tn, 128) * itm_in
    o_blk = _round_up(tn, 8) * _round_up(E, 128) * itm_out
    w_blk = _round_up(E, 8) * _round_up(C, 128) * itm_w
    b_blk = 8 * _round_up(E, 128) * 4
    scratch = 2 * _round_up(E, 8) * _round_up(chunk, 128) * 4
    est_vmem = 2 * (x_blk + o_blk + w_blk + b_blk) + scratch

    # Generation-aware scoped-VMEM cap: <= ~0.5x physical (64 MiB on v7x,
    # 128 MiB on v5e/v6e); only raise the limit when the tiles need it.
    try:
        phys_vmem = int(pltpu.get_tpu_info().vmem_capacity_bytes)
    except Exception:
        phys_vmem = 64 * 1024 * 1024
    vmem_limit = None
    if est_vmem > 16 * 1024 * 1024:
        vmem_limit = min(max(int(est_vmem * 3 // 2), 16 * 1024 * 1024),
                         phys_vmem // 2)

    bytes_accessed = (x3.size * itm_in + w.size * itm_w + b_row.size * 4
                      + B * N * E * itm_out)

    kernel = functools.partial(_proj_kernel, chunk=chunk)
    return pl.pallas_call(
        kernel,
        out_shape=jax.ShapeDtypeStruct((B, N, E), out_dtype),
        grid_spec=pltpu.PrefetchScalarGridSpec(
            num_scalar_prefetch=0,
            grid=grid,
            in_specs=[
                pl.BlockSpec((1, C, tn), lambda bb, j: (bb, 0, j)),  # tokens
                pl.BlockSpec((E, C), lambda bb, j: (0, 0)),          # weight
                pl.BlockSpec((1, E), lambda bb, j: (0, 0)),          # bias
            ],
            out_specs=pl.BlockSpec((1, tn, E), lambda bb, j: (bb, j, 0)),
        ),
        compiler_params=pltpu.CompilerParams(
            dimension_semantics=("parallel", "parallel"),
            vmem_limit_bytes=vmem_limit,
        ),
        cost_estimate=pl.CostEstimate(
            flops=2 * B * N * C * E,
            bytes_accessed=int(bytes_accessed),
            transcendentals=0,
        ),
    )(x3, w, b_row)


def _reference(x, weight, bias):
    B, C, H, W = x.shape
    return jnp.einsum(
        "bnc,ec->bne",
        jnp.transpose(x.reshape(B, C, H * W), (0, 2, 1)),
        weight,
    ) + bias


if __name__ == "__main__":
    key = jax.random.PRNGKey(0)

    # --- Test 1: module-spec sizes (dim=C=4, embed_dim=E=32), f32 path -------
    B, C, H, W, E = 2, 4, 16, 16, 32
    k1, k2, k3, key = jax.random.split(key, 4)
    x = jax.random.normal(k1, (B, C, H, W), dtype=jnp.float32)
    weight = jax.random.normal(k2, (E, C), dtype=jnp.float32) * 0.1
    bias = jax.random.normal(k3, (E,), dtype=jnp.float32) * 0.1

    ref = _reference(x, weight, bias)
    out = jax.block_until_ready(mlp_forward(x, weight, bias))
    assert out.shape == (B, H * W, E)
    assert jnp.allclose(out, ref, atol=1e-5), "f32 mismatch vs reference"

    # --- Test 2: bf16 OUTPUT (cast on store; halves dominant writeback) ------
    out_bf16 = jax.block_until_ready(
        mlp_forward(x, weight, bias, out_dtype=jnp.bfloat16))
    assert out_bf16.shape == (B, H * W, E)
    assert jnp.allclose(out_bf16.astype(jnp.float32), ref,
                        atol=2e-2, rtol=2e-2), "bf16-output mismatch"

    # --- Test 3: ragged token tiling (N=196 not a multiple of tn=128) --------
    Hr = Wr = 14
    k1, k2, k3, key = jax.random.split(key, 4)
    xr = jax.random.normal(k1, (1, C, Hr, Wr), dtype=jnp.float32)
    wr = jax.random.normal(k2, (E, C), dtype=jnp.float32) * 0.1
    br = jax.random.normal(k3, (E,), dtype=jnp.float32) * 0.1
    ref_r = _reference(xr, wr, br)
    out_r = jax.block_until_ready(mlp_forward(xr, wr, br, tn_max=128))
    assert out_r.shape == (1, Hr * Wr, E)
    assert jnp.allclose(out_r, ref_r, atol=1e-5), "ragged-tail mismatch"

    # --- Test 4: large-C MXU branch (realistic patch-embed style sizes) ------
    Cm, Em, Hm, Wm = 128, 256, 8, 8
    k1, k2, k3, key = jax.random.split(key, 4)
    xm = jax.random.normal(k1, (2, Cm, Hm, Wm), dtype=jnp.float32)
    wm = jax.random.normal(k2, (Em, Cm), dtype=jnp.float32) * 0.1
    bm = jax.random.normal(k3, (Em,), dtype=jnp.float32) * 0.1
    ref_m = _reference(xm, wm, bm)
    out_m = jax.block_until_ready(mlp_forward(xm, wm, bm))
    assert out_m.shape == (2, Hm * Wm, Em)
    assert jnp.allclose(out_m, ref_m, atol=2e-2, rtol=2e-2), "MXU-branch mismatch"

    print("KERNEL_OK")
</pallas_src>

<mosaic_0001>
module attributes {stable_mosaic.version = 11 : i64} {
  func.func @_proj_kernel(%arg0: i32, %arg1: i32, %arg2: memref<1x4x256xf32, #tpu.memory_space<vmem>>, %arg3: memref<32x4xf32, #tpu.memory_space<vmem>>, %arg4: memref<1x32xf32, #tpu.memory_space<vmem>>, %arg5: memref<1x256x32xf32, #tpu.memory_space<vmem>>) attributes {dimension_semantics = [#tpu.dimension_semantics<parallel>, #tpu.dimension_semantics<parallel>], iteration_bounds = array<i64: 2, 1>, scalar_prefetch = 0 : i64, scratch_operands = 0 : i64, tpu.core_type = #tpu.core_type<tc>, window_params = [{transform_indices = @transform_0, window_bounds = array<i64: 1, 4, 256>}, {pipeline_mode = #tpu.pipeline_mode<synchronous>, transform_indices = @transform_1, window_bounds = array<i64: 32, 4>}, {pipeline_mode = #tpu.pipeline_mode<synchronous>, transform_indices = @transform_2, window_bounds = array<i64: 1, 32>}, {transform_indices = @transform_3, window_bounds = array<i64: 1, 256, 32>}]} {
    %c0 = arith.constant 0 : index
    %c0_0 = arith.constant 0 : index
    %c0_1 = arith.constant 0 : index
    %0 = vector.load %arg2[%c0, %c0_0, %c0_1] : memref<1x4x256xf32, #tpu.memory_space<vmem>>, vector<1x4x256xf32>
    %1 = vector.shape_cast %0 : vector<1x4x256xf32> to vector<4x256xf32>
    %c0_2 = arith.constant 0 : index
    %c0_3 = arith.constant 0 : index
    %2 = vector.load %arg3[%c0_2, %c0_3] : memref<32x4xf32, #tpu.memory_space<vmem>>, vector<32x4xf32>
    %c0_4 = arith.constant 0 : index
    %c0_5 = arith.constant 0 : index
    %3 = vector.load %arg4[%c0_4, %c0_5] : memref<1x32xf32, #tpu.memory_space<vmem>>, vector<1x32xf32>
    %cst = arith.constant 0.000000e+00 : f32
    %4 = vector.broadcast %cst : f32 to vector<32x256xf32>
    %5 = vector.extract_strided_slice %2 {offsets = [0, 0], sizes = [32, 1], strides = [1, 1]} : vector<32x4xf32> to vector<32x1xf32>
    %6 = vector.extract_strided_slice %1 {offsets = [0, 0], sizes = [1, 256], strides = [1, 1]} : vector<4x256xf32> to vector<1x256xf32>
    %7 = vector.broadcast %5 : vector<32x1xf32> to vector<32x256xf32>
    %8 = vector.broadcast %6 : vector<1x256xf32> to vector<32x256xf32>
    %9 = arith.mulf %7, %8 : vector<32x256xf32>
    %10 = arith.addf %4, %9 : vector<32x256xf32>
    %11 = vector.extract_strided_slice %2 {offsets = [0, 1], sizes = [32, 1], strides = [1, 1]} : vector<32x4xf32> to vector<32x1xf32>
    %12 = vector.extract_strided_slice %1 {offsets = [1, 0], sizes = [1, 256], strides = [1, 1]} : vector<4x256xf32> to vector<1x256xf32>
    %13 = vector.broadcast %11 : vector<32x1xf32> to vector<32x256xf32>
    %14 = vector.broadcast %12 : vector<1x256xf32> to vector<32x256xf32>
    %15 = arith.mulf %13, %14 : vector<32x256xf32>
    %16 = arith.addf %10, %15 : vector<32x256xf32>
    %17 = vector.extract_strided_slice %2 {offsets = [0, 2], sizes = [32, 1], strides = [1, 1]} : vector<32x4xf32> to vector<32x1xf32>
    %18 = vector.extract_strided_slice %1 {offsets = [2, 0], sizes = [1, 256], strides = [1, 1]} : vector<4x256xf32> to vector<1x256xf32>
    %19 = vector.broadcast %17 : vector<32x1xf32> to vector<32x256xf32>
    %20 = vector.broadcast %18 : vector<1x256xf32> to vector<32x256xf32>
    %21 = arith.mulf %19, %20 : vector<32x256xf32>
    %22 = arith.addf %16, %21 : vector<32x256xf32>
    %23 = vector.extract_strided_slice %2 {offsets = [0, 3], sizes = [32, 1], strides = [1, 1]} : vector<32x4xf32> to vector<32x1xf32>
    %24 = vector.extract_strided_slice %1 {offsets = [3, 0], sizes = [1, 256], strides = [1, 1]} : vector<4x256xf32> to vector<1x256xf32>
    %25 = vector.broadcast %23 : vector<32x1xf32> to vector<32x256xf32>
    %26 = vector.broadcast %24 : vector<1x256xf32> to vector<32x256xf32>
    %27 = arith.mulf %25, %26 : vector<32x256xf32>
    %28 = arith.addf %22, %27 : vector<32x256xf32>
    %29 = tpu.transpose %28, [1, 0] : vector<32x256xf32> -> vector<256x32xf32>
    %30 = vector.broadcast %3 : vector<1x32xf32> to vector<256x32xf32>
    %31 = arith.addf %29, %30 : vector<256x32xf32>
    %c0_6 = arith.constant 0 : index
    %c0_7 = arith.constant 0 : index
    %c0_8 = arith.constant 0 : index
    %32 = vector.load %arg5[%c0_6, %c0_7, %c0_8] : memref<1x256x32xf32, #tpu.memory_space<vmem>>, vector<1x256x32xf32>
    %33 = vector.shape_cast %32 : vector<1x256x32xf32> to vector<256x32xf32>
    %34 = vector.shape_cast %31 : vector<256x32xf32> to vector<1x256x32xf32>
    tpu.vector_store %arg5[%c0_6, %c0_7, %c0_8], %34 {strides = array<i32>} : memref<1x256x32xf32, #tpu.memory_space<vmem>>, vector<1x256x32xf32>,
    return
  }
  func.func @transform_0(%arg0: i32, %arg1: i32) -> (i32, i32, i32) {
    %c0_i32 = arith.constant 0 : i32
    %c0_i32_0 = arith.constant 0 : i32
    return %arg0, %c0_i32, %arg1 : i32, i32, i32
  }
  func.func @transform_1(%arg0: i32, %arg1: i32) -> (i32, i32) {
    %c0_i32 = arith.constant 0 : i32
    %c0_i32_0 = arith.constant 0 : i32
    %c0_i32_1 = arith.constant 0 : i32
    return %c0_i32, %c0_i32_0 : i32, i32
  }
  func.func @transform_2(%arg0: i32, %arg1: i32) -> (i32, i32) {
    %c0_i32 = arith.constant 0 : i32
    %c0_i32_0 = arith.constant 0 : i32
    %c0_i32_1 = arith.constant 0 : i32
    return %c0_i32, %c0_i32_0 : i32, i32
  }
  func.func @transform_3(%arg0: i32, %arg1: i32) -> (i32, i32, i32) {
    %c0_i32 = arith.constant 0 : i32
    %c0_i32_0 = arith.constant 0 : i32
    return %arg0, %arg1, %c0_i32 : i32, i32, i32
  }
}

</mosaic_0001>

<bundles_post_ra>
// kernel: tpu_custom_call.1
= control target key start
LH: loop header
LB: loop body
LE: loop exit
PB: predicated region body
PF: predicated region fallthrough
CT: control target
= control target key end

     0   :  { %s748_s12 = smov 0   ;;  %s750_s13 = smov 0   ;;  %s940_s0 = inlined_call_operand.vmem [shape: f32[2,4,256], index: 0, kind: input, shape index: {}]   ;;  %s941_s1 = inlined_call_operand.vmem [shape: f32[32,4], index: 1, kind: input, shape index: {}]   ;;  %s942_s2 = inlined_call_operand.vmem [shape: f32[1,32], index: 2, kind: input, shape index: {}]   ;;  %s943_s3 = inlined_call_operand.vmem [shape: f32[2,256,32], index: 3, kind: output, shape index: {}]  }
   0x1   :  { %s752_s14 = smov 0  }
   0x2 LB: > { %s25_s15 = sadd.s32 1, %s718_s13  ;;  %p647_p0 = scmp.ge.s32.totalorder %s722_s14, 1  ;;  %s722_s14 = sphi %s752_s14, %s13_s14   ;;  %s718_s13 = sphi %s750_s13, %s945_s13   ;;  %s714_s12 = sphi %s748_s12, %s944_s12  }
   0x3   : > { %p27_p1 = scmp.ge.s32.totalorder %s25_s15, 2  ;;  %p158_p2 = scmp.lt.s32.totalorder %s722_s14, 3 }
   0x5   : > { %s947_s15 = smov (%p27_p1, %s25_s15), 0  ;;  %p159_p3 = pnand %p647_p0, %p158_p2 }
   0x6   : > { %v212_v0 = vld [vmem:[%s941_s1 + $0x8] sm:$0xff] (!%p159_p3)  ;;  %v211_v1 = vld [vmem:[%s941_s1] sm:$0xff] (!%p159_p3)  ;;  %v724_v2 = vmov (!%p159_p3), 1   ;;  %v725_v3 = vmov (!%p159_p3), 0   ;;  %v213_v4 = vld [vmem:[%s941_s1 + $0x10] sm:$0xff] (!%p159_p3)  ;;  %v726_v5 = vmov (!%p159_p3), 2   ;;  %v237_v8 = vlaneseq (!%p159_p3) }
   0x7   : > { %162 = sbr.rel (%p159_p3) target bundleno = 365 (0x16d), region = 32  ;;  %686 = vset.pattern.permute.xlu0 (!%p159_p3), %v724_v2  ;;  %688 = vset.pattern.permute.xlu1 (!%p159_p3), %v725_v3  ;;  %v727_v6 = vmov (!%p159_p3), 3   ;;  %v214_v7 = vld [vmem:[%s941_s1 + $0x18] sm:$0xff] (!%p159_p3)  ;;  %p191_p4 = scmp.lt.s32.totalorder (!%p159_p3), %s714_s12, 1  ;;  %vm523_vm0 = vcmask (!%p159_p3), 261120  }
   0x8   : > { %223 = vperm.xlu1 (!%p159_p3), %688, %v212_v0   ;;  %272 = vperm.xlu0 (!%p159_p3), %686, %v211_v1   ;;  %v238_v9 = vshrl.u32 (!%p159_p3), %v237_v8, 7 }
   0xa   : > { %v239_v12 = vsub.s32 (!%p159_p3), 0, %v238_v9  ;;  %v243_v13 = vsub.s32 (!%p159_p3), 4, %v238_v9  ;;  %v289_v14 = vsub.s32 (!%p159_p3), 1, %v238_v9  ;;  %v293_v15 = vsub.s32 (!%p159_p3), 5, %v238_v9 }
   0xb   : > { %v339_v17 = vsub.s32 (!%p159_p3), 2, %v238_v9  ;;  %v343_v18 = vsub.s32 (!%p159_p3), 6, %v238_v9  ;;  %v389_v27 = vsub.s32 (!%p159_p3), 3, %v238_v9  ;;  %v393_v28 = vsub.s32 (!%p159_p3), 7, %v238_v9 }
   0xc   : > { %689 = vset.pattern.permute.xlu1 (!%p159_p3), %v724_v2  ;;  %687 = vset.pattern.permute.xlu0 (!%p159_p3), %v725_v3 }
   0xd   : > { %276 = vperm.xlu1 (!%p159_p3), %689, %v212_v0   ;;  %218 = vperm.xlu0 (!%p159_p3), %687, %v211_v1  }
   0xe   : > { %s949_s12 = smov (!%p191_p4, %s714_s12), 1 }
   0xf   : > { %s655_s24 = sshll.u32 %s949_s12, 3  ;;  %s656_s28 = sshll.u32 %s949_s12, 8 }
  0x10   : > { %s198_s27 = scalar_lea.vmem %s940_s0, %s655_s24  ;;  %s833_s6 = scalar_lea.vmem %s943_s3, %s656_s28 }
  0x11   : > { %690 = vset.pattern.permute.xlu1 %v726_v5  ;;  %228 = vperm.xlu0 %687, %v213_v4   ;;  %v210_v16 = vld [vmem:[%s198_s27] sm:$0xff] }
  0x12   : > { %322 = vperm.xlu1 %690, %v211_v1   ;;  %v240_v21 = vrot.slane %v210_v16, %v239_v12  ;;  %v244_v22 = vrot.slane %v210_v16, %v243_v13  ;;  %v290_v23 = vrot.slane %v210_v16, %v289_v14  ;;  %v294_v24 = vrot.slane %v210_v16, %v293_v15 }
  0x13   : > { %v340_v25 = vrot.slane %v210_v16, %v339_v17  ;;  %v344_v26 = vrot.slane %v210_v16, %v343_v18  ;;  %v390_v37 = vrot.slane %v210_v16, %v389_v27  ;;  %v394_v38 = vrot.slane %v210_v16, %v393_v28 }
  0x14   : > { %v788_v30 = vrot.slane %v240_v21, %v239_v12  ;;  %v790_v31 = vrot.slane %v244_v22, %v239_v12  ;;  %v300_v32 = vrot.slane %v290_v23, %v289_v14  ;;  %v304_v33 = vrot.slane %v294_v24, %v289_v14 }
  0x15   : > { %695 = vset.pattern.permute.xlu0 %v726_v5  ;;  %v792_v35 = vrot.slane %v340_v25, %v339_v17  ;;  %v794_v36 = vrot.slane %v344_v26, %v339_v17  ;;  %v798_v45 = vrot.slane %v390_v37, %v389_v27  ;;  %v800_v46 = vrot.slane %v394_v38, %v389_v27 }
  0x16   : > { %691 = vset.pattern.permute.xlu1 %v724_v2  ;;  %330 = vperm.xlu0 %695, %v213_v4  }
  0x17   : > { %280 = vperm.xlu1 %691, %v213_v4  }
  0x1a   : > { %696 = vset.pattern.permute.xlu0 %v727_v6 }
  0x1b   : > { %692 = vset.pattern.permute.xlu1 %v726_v5  ;;  %372 = vperm.xlu0 %696, %v211_v1  }
  0x1c   : > { %326 = vperm.xlu1 %692, %v212_v0  }
  0x1f   : > { %380 = vperm.xlu0 %696, %v213_v4  }
  0x20   : > { %693 = vset.pattern.permute.xlu1 %v725_v3 }
  0x21   : > { %233 = vperm.xlu1 %693, %v214_v7  }
  0x25   : > { %694 = vset.pattern.permute.xlu1 %v724_v2 }
  0x26   : > { %284 = vperm.xlu1 %694, %v214_v7  }
  0x2a   : > { %697 = vset.pattern.permute.xlu1 %v727_v6 }
  0x2b   : > { %376 = vperm.xlu1 %697, %v212_v0  }
  0x2f   : > { %698 = vset.pattern.permute.xlu1 %v726_v5 }
  0x30   : > { %334 = vperm.xlu1 %698, %v214_v7  }
  0x34   : > { %699 = vset.pattern.permute.xlu1 %v727_v6 }
  0x35   : > { %384 = vperm.xlu1 %699, %v214_v7  }
  0x87   : > { %v224_v10 = vpop.permute.xlu1 %223  ;;  %v273_v11 = vpop.permute.xlu0 %272 }
  0x88   : > { %v305_v39 = vmul.f32 %v300_v32, %v273_v11  ;;  %v306_v40 = vmul.f32 %v304_v33, %v273_v11  ;;  %v257_v3 = vmul.f32 %v788_v30, %v224_v10  ;;  %v258_v4 = vmul.f32 %v790_v31, %v224_v10 }
  0x8c   : > { %v277_v19 = vpop.permute.xlu1 %276  ;;  %v219_v20 = vpop.permute.xlu0 %218 }
  0x8d   : > { %v255_v41 = vmul.f32 %v788_v30, %v219_v20  ;;  %v256_v42 = vmul.f32 %v790_v31, %v219_v20  ;;  %v307_v60 = vmul.f32 %v300_v32, %v277_v19  ;;  %v308_v61 = vmul.f32 %v304_v33, %v277_v19 }
  0x8f   : > { %v313_v47 = vadd.f32 %v305_v39, %v255_v41  ;;  %v314_v48 = vadd.f32 %v306_v40, %v256_v42  ;;  %v315_v7 = vadd.f32 %v307_v60, %v257_v3  ;;  %v316_v8 = vadd.f32 %v308_v61, %v258_v4 }
  0x90   : > { %v229_v29 = vpop.permute.xlu0 %228 }
  0x91   : > { %v323_v34 = vpop.permute.xlu1 %322  ;;  %v259_v63 = vmul.f32 %v788_v30, %v229_v29  ;;  %v260_v0 = vmul.f32 %v790_v31, %v229_v29 }
  0x92   : > { %v355_v49 = vmul.f32 %v792_v35, %v323_v34  ;;  %v356_v50 = vmul.f32 %v794_v36, %v323_v34 }
  0x94   : > { %v363_v52 = vadd.f32 %v355_v49, %v313_v47  ;;  %v364_v53 = vadd.f32 %v356_v50, %v314_v48 }
  0x95   : > { %v331_v43 = vpop.permute.xlu0 %330 }
  0x96   : > { %v281_v44 = vpop.permute.xlu1 %280  ;;  %v359_v13 = vmul.f32 %v792_v35, %v331_v43  ;;  %v360_v14 = vmul.f32 %v794_v36, %v331_v43 }
  0x97   : > { %v309_v1 = vmul.f32 %v300_v32, %v281_v44  ;;  %v310_v2 = vmul.f32 %v304_v33, %v281_v44 }
  0x99   : > { %v317_v11 = vadd.f32 %v309_v1, %v259_v63  ;;  %v318_v12 = vadd.f32 %v310_v2, %v260_v0 }
  0x9a   : > { %v373_v51 = vpop.permute.xlu0 %372 }
  0x9b   : > { %v405_v54 = vmul.f32 %v798_v45, %v373_v51  ;;  %v406_v55 = vmul.f32 %v800_v46, %v373_v51  ;;  %v327_v56 = vpop.permute.xlu1 %326  ;;  %v367_v23 = vadd.f32 %v359_v13, %v317_v11  ;;  %v368_v24 = vadd.f32 %v360_v14, %v318_v12 }
  0x9c   : > { %v357_v5 = vmul.f32 %v792_v35, %v327_v56  ;;  %v358_v6 = vmul.f32 %v794_v36, %v327_v56 }
  0x9d   : > { %v413_v57 = vadd.f32 %v405_v54, %v363_v52  ;;  %v414_v58 = vadd.f32 %v406_v55, %v364_v53 }
  0x9e   : > { %v381_v9 = vpop.permute.xlu0 %380  ;;  %v365_v16 = vadd.f32 %v357_v5, %v315_v7  ;;  %v366_v17 = vadd.f32 %v358_v6, %v316_v8 }
  0x9f   : > { %453 = vxpose.xlu0.b32.start [1/4] (short) %v414_v58, 128  ;;  %421 = vxpose.xlu1.b32.start [1/4] (short) %v413_v57, 128  ;;  %v409_v19 = vmul.f32 %v798_v45, %v381_v9  ;;  %v410_v20 = vmul.f32 %v800_v46, %v381_v9 }
  0xa0   : > { %v234_v59 = vpop.permute.xlu1 %233 }
  0xa1   : > { %v417_v28 = vadd.f32 %v409_v19, %v367_v23  ;;  %v418_v29 = vadd.f32 %v410_v20, %v368_v24  ;;  %v261_v34 = vmul.f32 %v788_v30, %v234_v59  ;;  %v262_v37 = vmul.f32 %v790_v31, %v234_v59  ;;  %v828_v31 = vld [vmem:[%s942_s2] ss:$0 sm:$0xff] }
  0xa5   : > { %v285_v62 = vpop.permute.xlu1 %284 }
  0xa6   : > { %v311_v25 = vmul.f32 %v300_v32, %v285_v62  ;;  %v312_v26 = vmul.f32 %v304_v33, %v285_v62 }
  0xa8   : > { %v319_v40 = vadd.f32 %v311_v25, %v261_v34  ;;  %v320_v41 = vadd.f32 %v312_v26, %v262_v37 }
  0xaa   : > { %v377_v15 = vpop.permute.xlu1 %376 }
  0xab   : > { %v407_v18 = vmul.f32 %v798_v45, %v377_v15  ;;  %v408_v10 = vmul.f32 %v800_v46, %v377_v15 }
  0xad   : > { %v415_v21 = vadd.f32 %v407_v18, %v365_v16  ;;  %v416_v22 = vadd.f32 %v408_v10, %v366_v17 }
  0xaf   : > { %v335_v27 = vpop.permute.xlu1 %334  ;;  %454 = vxpose.xlu0.b32.cont [2/4] (short) %v416_v22, 128  ;;  %422 = vxpose.xlu1.b32.cont [2/4] (short) %v415_v21, 128 }
  0xb0   : > { %v361_v38 = vmul.f32 %v792_v35, %v335_v27  ;;  %v362_v39 = vmul.f32 %v794_v36, %v335_v27 }
  0xb2   : > { %v369_v33 = vadd.f32 %v361_v38, %v319_v40  ;;  %v370_v42 = vadd.f32 %v362_v39, %v320_v41 }
  0xb3   : > { %455 = vxpose.xlu0.b32.cont [3/4] (short) %v418_v29, 128  ;;  %423 = vxpose.xlu1.b32.cont [3/4] (short) %v417_v28, 128 }
  0xb4   : > { %v385_v32 = vpop.permute.xlu1 %384 }
  0xb5   : > { %v411_v43 = vmul.f32 %v798_v45, %v385_v32  ;;  %v412_v44 = vmul.f32 %v800_v46, %v385_v32 }
  0xb7   : > { %v419_v47 = vadd.f32 %v411_v43, %v369_v33  ;;  %v420_v30 = vadd.f32 %v412_v44, %v370_v42 }
  0xb9   : > { %456 = vxpose.xlu0.b32.end [4/4] (short) %v420_v30, 128  ;;  %424 = vxpose.xlu1.b32.end [4/4] (short) %v419_v47, 128 }
 0x12d   : > { %v469_v35 = vpop.trf.xlu0  ;;  %v437_v36 = vpop.trf.xlu1 }
 0x12e   : > { %v507_v45 = vadd.f32 %v828_v31, %v469_v35  ;;  %v491_v46 = vadd.f32 %v828_v31, %v437_v36 }
 0x130   : > { %540 = vst.msk [vmem:[%s833_s6 + $0x80] sm:$0xff] %vm523_vm0, %v507_v45  ;;  %524 = vst.msk [vmem:[%s833_s6] sm:$0xff] %vm523_vm0, %v491_v46 }
 0x131   : > { %v470_v48 = vpop.trf.xlu0  ;;  %v438_v49 = vpop.trf.xlu1 }
 0x132   : > { %v508_v50 = vadd.f32 %v828_v31, %v470_v48  ;;  %v492_v51 = vadd.f32 %v828_v31, %v438_v49 }
 0x134   : > { %541 = vst.msk [vmem:[%s833_s6 + $0x88] sm:$0xff] %vm523_vm0, %v508_v50  ;;  %525 = vst.msk [vmem:[%s833_s6 + $0x8] sm:$0xff] %vm523_vm0, %v492_v51 }
 0x135   : > { %v471_v52 = vpop.trf.xlu0  ;;  %v439_v53 = vpop.trf.xlu1 }
 0x136   : > { %v509_v54 = vadd.f32 %v828_v31, %v471_v52  ;;  %v493_v55 = vadd.f32 %v828_v31, %v439_v53 }
 0x138   : > { %542 = vst.msk [vmem:[%s833_s6 + $0x90] sm:$0xff] %vm523_vm0, %v509_v54  ;;  %526 = vst.msk [vmem:[%s833_s6 + $0x10] sm:$0xff] %vm523_vm0, %v493_v55 }
 0x139   : > { %v472_v56 = vpop.trf.xlu0  ;;  %v440_v57 = vpop.trf.xlu1 }
 0x13a   : > { %v510_v58 = vadd.f32 %v828_v31, %v472_v56  ;;  %v494_v59 = vadd.f32 %v828_v31, %v440_v57 }
 0x13c   : > { %543 = vst.msk [vmem:[%s833_s6 + $0x98] sm:$0xff] %vm523_vm0, %v510_v58  ;;  %527 = vst.msk [vmem:[%s833_s6 + $0x18] sm:$0xff] %vm523_vm0, %v494_v59 }
 0x13d   : > { %v473_v60 = vpop.trf.xlu0  ;;  %v441_v61 = vpop.trf.xlu1 }
 0x13e   : > { %v511_v62 = vadd.f32 %v828_v31, %v473_v60  ;;  %v495_v63 = vadd.f32 %v828_v31, %v441_v61 }
 0x140   : > { %544 = vst.msk [vmem:[%s833_s6 + $0xa0] sm:$0xff] %vm523_vm0, %v511_v62  ;;  %528 = vst.msk [vmem:[%s833_s6 + $0x20] sm:$0xff] %vm523_vm0, %v495_v63 }
 0x141   : > { %v474_v0 = vpop.trf.xlu0  ;;  %v442_v1 = vpop.trf.xlu1 }
 0x142   : > { %v512_v2 = vadd.f32 %v828_v31, %v474_v0  ;;  %v496_v3 = vadd.f32 %v828_v31, %v442_v1 }
 0x144   : > { %545 = vst.msk [vmem:[%s833_s6 + $0xa8] sm:$0xff] %vm523_vm0, %v512_v2  ;;  %529 = vst.msk [vmem:[%s833_s6 + $0x28] sm:$0xff] %vm523_vm0, %v496_v3 }
 0x145   : > { %v475_v4 = vpop.trf.xlu0  ;;  %v443_v5 = vpop.trf.xlu1 }
 0x146   : > { %v513_v6 = vadd.f32 %v828_v31, %v475_v4  ;;  %v497_v7 = vadd.f32 %v828_v31, %v443_v5 }
 0x148   : > { %546 = vst.msk [vmem:[%s833_s6 + $0xb0] sm:$0xff] %vm523_vm0, %v513_v6  ;;  %530 = vst.msk [vmem:[%s833_s6 + $0x30] sm:$0xff] %vm523_vm0, %v497_v7 }
 0x149   : > { %v476_v8 = vpop.trf.xlu0  ;;  %v444_v9 = vpop.trf.xlu1 }
 0x14a   : > { %v514_v11 = vadd.f32 %v828_v31, %v476_v8  ;;  %v498_v12 = vadd.f32 %v828_v31, %v444_v9 }
 0x14c   : > { %547 = vst.msk [vmem:[%s833_s6 + $0xb8] sm:$0xff] %vm523_vm0, %v514_v11  ;;  %531 = vst.msk [vmem:[%s833_s6 + $0x38] sm:$0xff] %vm523_vm0, %v498_v12 }
 0x14d   : > { %v477_v13 = vpop.trf.xlu0  ;;  %v445_v14 = vpop.trf.xlu1 }
 0x14e   : > { %v515_v15 = vadd.f32 %v828_v31, %v477_v13  ;;  %v499_v16 = vadd.f32 %v828_v31, %v445_v14 }
 0x150   : > { %548 = vst.msk [vmem:[%s833_s6 + $0xc0] sm:$0xff] %vm523_vm0, %v515_v15  ;;  %532 = vst.msk [vmem:[%s833_s6 + $0x40] sm:$0xff] %vm523_vm0, %v499_v16 }
 0x151   : > { %v478_v17 = vpop.trf.xlu0  ;;  %v446_v18 = vpop.trf.xlu1 }
 0x152   : > { %v516_v10 = vadd.f32 %v828_v31, %v478_v17  ;;  %v500_v19 = vadd.f32 %v828_v31, %v446_v18 }
 0x154   : > { %549 = vst.msk [vmem:[%s833_s6 + $0xc8] sm:$0xff] %vm523_vm0, %v516_v10  ;;  %533 = vst.msk [vmem:[%s833_s6 + $0x48] sm:$0xff] %vm523_vm0, %v500_v19 }
 0x155   : > { %v479_v20 = vpop.trf.xlu0  ;;  %v447_v21 = vpop.trf.xlu1 }
 0x156   : > { %v517_v22 = vadd.f32 %v828_v31, %v479_v20  ;;  %v501_v23 = vadd.f32 %v828_v31, %v447_v21 }
 0x158   : > { %550 = vst.msk [vmem:[%s833_s6 + $0xd0] sm:$0xff] %vm523_vm0, %v517_v22  ;;  %534 = vst.msk [vmem:[%s833_s6 + $0x50] sm:$0xff] %vm523_vm0, %v501_v23 }
 0x159   : > { %v480_v24 = vpop.trf.xlu0  ;;  %v448_v25 = vpop.trf.xlu1 }
 0x15a   : > { %v518_v26 = vadd.f32 %v828_v31, %v480_v24  ;;  %v502_v27 = vadd.f32 %v828_v31, %v448_v25 }
 0x15c   : > { %551 = vst.msk [vmem:[%s833_s6 + $0xd8] sm:$0xff] %vm523_vm0, %v518_v26  ;;  %535 = vst.msk [vmem:[%s833_s6 + $0x58] sm:$0xff] %vm523_vm0, %v502_v27 }
 0x15d   : > { %v481_v28 = vpop.trf.xlu0  ;;  %v449_v29 = vpop.trf.xlu1 }
 0x15e   : > { %v519_v34 = vadd.f32 %v828_v31, %v481_v28  ;;  %v503_v37 = vadd.f32 %v828_v31, %v449_v29 }
 0x160   : > { %552 = vst.msk [vmem:[%s833_s6 + $0xe0] sm:$0xff] %vm523_vm0, %v519_v34  ;;  %536 = vst.msk [vmem:[%s833_s6 + $0x60] sm:$0xff] %vm523_vm0, %v503_v37 }
 0x161   : > { %v482_v38 = vpop.trf.xlu0  ;;  %v450_v39 = vpop.trf.xlu1 }
 0x162   : > { %v520_v40 = vadd.f32 %v828_v31, %v482_v38  ;;  %v504_v41 = vadd.f32 %v828_v31, %v450_v39 }
 0x164   : > { %553 = vst.msk [vmem:[%s833_s6 + $0xe8] sm:$0xff] %vm523_vm0, %v520_v40  ;;  %537 = vst.msk [vmem:[%s833_s6 + $0x68] sm:$0xff] %vm523_vm0, %v504_v41 }
 0x165   : > { %v483_v32 = vpop.trf.xlu0  ;;  %v451_v33 = vpop.trf.xlu1 }
 0x166   : > { %v521_v42 = vadd.f32 %v828_v31, %v483_v32  ;;  %v505_v43 = vadd.f32 %v828_v31, %v451_v33 }
 0x168   : > { %554 = vst.msk [vmem:[%s833_s6 + $0xf0] sm:$0xff] %vm523_vm0, %v521_v42  ;;  %538 = vst.msk [vmem:[%s833_s6 + $0x70] sm:$0xff] %vm523_vm0, %v505_v43 }
 0x169   : > { %v484_v44 = vpop.trf.xlu0  ;;  %v452_v47 = vpop.trf.xlu1 }
 0x16a   : > { %v522_v30 = vadd.f32 %v828_v31, %v484_v44  ;;  %v506_v35 = vadd.f32 %v828_v31, %v452_v47 }
 0x16c   : > { %555 = vst.msk [vmem:[%s833_s6 + $0xf8] sm:$0xff] %vm523_vm0, %v522_v30  ;;  %539 = vst.msk [vmem:[%s833_s6 + $0x78] sm:$0xff] %vm523_vm0, %v506_v35 }
 0x16d PF: > { %s13_s14 = sadd.s32 1, %s722_s14   ;;  %s944_s12 = smov %s718_s13 }
 0x16e   : > { %p10_p5 = scmp.ge.s32.totalorder %s13_s14, 4   ;;  %s945_s13 = smov %s947_s15 }
 0x170   :  { %12 = sbr.rel (!%p10_p5) target bundleno = 2 (0x2), region = 62 }

</bundles_post_ra>
